<compile_context>
chip_gen: v6e
topology: v6e:2x2x1
jax: 0.10.0
libtpu: 0.0.40
codegen_flags: <defaults>
</compile_context>

<pallas_src>
import jax
import jax.numpy as jnp
from jax.experimental import pallas as pl
from jax.experimental.pallas import tpu as pltpu


def bilinear_tanh_kernel(x1_ref, x2_ref, rep1_ref, rep2_ref, wf_ref, b_ref,
                         o_ref):
    # x1: (tb, D1) f32 | x2: (tb, D2) f32
    # rep1: (D1, D1*D2) bf16 0/1 with rep1[i, i*D2+j] = 1   (element-repeat)
    # rep2: (D2, D1*D2) bf16 0/1 with rep2[j, i*D2+j] = 1   (lane-tile)
    # wf:   (D1*D2, E)  bf16 with wf[i*D2+j, e] = W[e, i, j]
    # b:    (1, E) f32
    x1 = x1_ref[...]
    x2 = x2_ref[...]

    # Replications via tiny constant 0/1 MXU matmuls: guaranteed gather-free
    # (no jnp.repeat / reshape / concat lowering), f32 results.
    x1_rep = jnp.dot(x1.astype(jnp.bfloat16), rep1_ref[...],
                     preferred_element_type=jnp.float32)       # (tb, D1*D2)
    x2_tile = jnp.dot(x2.astype(jnp.bfloat16), rep2_ref[...],
                      preferred_element_type=jnp.float32)      # (tb, D1*D2)

    # Outer-product feature: f32 product on the VPU (v5e-safe), bf16 for MXU.
    z = (x1_rep * x2_tile).astype(jnp.bfloat16)                # (tb, D1*D2)

    # Single deep-K MXU matmul, f32 accumulation.
    acc = jnp.dot(z, wf_ref[...], preferred_element_type=jnp.float32)  # (tb, E)

    # Epilogue in f32: bias + tanh (EUP), store at native emb_dim width.
    o_ref[...] = jnp.tanh(acc + b_ref[...]).astype(o_ref.dtype)


def prepare_bilinear_params(w, bias, *, weight_dtype=jnp.bfloat16):
    """Pack nn.Bilinear params once (amortized across all forward calls).

    w: (E, D1, D2), bias: (E,)  ->
      wf:   (D1*D2, E) weight_dtype, wf[i*D2+j, e] = W[e, i, j]
      rep1: (D1, D1*D2) 0/1, rep1[i, i*D2+j] = 1
      rep2: (D2, D1*D2) 0/1, rep2[j, i*D2+j] = 1
      bias_p: (1, E) f32
    """
    e, d1, d2 = w.shape
    k = d1 * d2
    wf = jnp.transpose(w, (1, 2, 0)).reshape(k, e).astype(weight_dtype)
    lane = jnp.arange(k)
    rep1 = (jnp.arange(d1)[:, None] == (lane[None, :] // d2)).astype(weight_dtype)
    rep2 = (jnp.arange(d2)[:, None] == (lane[None, :] % d2)).astype(weight_dtype)
    bias_p = bias.astype(jnp.float32).reshape(1, e)
    return wf, rep1, rep2, bias_p


def _choose_batch_tiling(batch, tb_max):
    """Pick (tile_batch, padded_batch): multiples of 8, grid even when >1."""
    bp8 = pl.cdiv(batch, 8) * 8
    if bp8 <= tb_max:
        return bp8, bp8                       # single tile, no lane/HBM waste
    n = pl.cdiv(bp8, tb_max)
    if n % 2:                                 # even grid -> both v7x TCs busy
        n += 1
    tb = pl.cdiv(pl.cdiv(bp8, n), 8) * 8
    return tb, n * tb


def submatrix_ae_forward(x1, x2, wf, rep1, rep2, bias_p, *, tb_max=1024,
                         out_dtype=None):
    """tanh(Bilinear(x1, x2)) with pre-packed params. Returns (B, emb_dim).

    tb_max: batch tile upper bound; sweep {512, 1024} for peak HBM roofline.
    out_dtype: set to jnp.bfloat16 to halve the dominant output HBM stream
               if downstream precision allows (default: x1.dtype).
    """
    B, d1 = x1.shape
    b2, d2 = x2.shape
    assert B == b2
    k, e = wf.shape
    assert k == d1 * d2
    assert rep1.shape == (d1, k) and rep2.shape == (d2, k)
    assert bias_p.shape == (1, e)
    out_dtype = x1.dtype if out_dtype is None else out_dtype

    tb, bp = _choose_batch_tiling(B, tb_max)
    if bp != B:
        x1 = jnp.pad(x1, ((0, bp - B), (0, 0)))
        x2 = jnp.pad(x2, ((0, bp - B), (0, 0)))

    def run(single_buffer):
        # Grid-invariant operands: constant index maps (fetched once /
        # revisited); single-buffered when supported to halve their VMEM
        # reservation (matters at production weight sizes on v7x's 64 MiB).
        inv = {"pipeline_mode": pl.Buffered(1)} if single_buffer else {}
        grid_spec = pltpu.PrefetchScalarGridSpec(
            num_scalar_prefetch=0,
            grid=(bp // tb,),
            in_specs=[
                pl.BlockSpec((tb, d1), lambda i: (i, 0)),
                pl.BlockSpec((tb, d2), lambda i: (i, 0)),
                pl.BlockSpec((d1, k), lambda i: (0, 0), **inv),
                pl.BlockSpec((d2, k), lambda i: (0, 0), **inv),
                pl.BlockSpec((k, e), lambda i: (0, 0), **inv),
                pl.BlockSpec((1, e), lambda i: (0, 0), **inv),
            ],
            out_specs=pl.BlockSpec((tb, e), lambda i: (i, 0)),
        )
        return pl.pallas_call(
            bilinear_tanh_kernel,
            out_shape=jax.ShapeDtypeStruct((bp, e), out_dtype),
            grid_spec=grid_spec,
            compiler_params=pltpu.CompilerParams(
                dimension_semantics=("parallel",)),
        )(x1, x2, rep1, rep2, wf, bias_p)

    try:
        out = run(True)
    except Exception:
        # pipeline_mode=pl.Buffered(1) not supported by this JAX version;
        # fall back to default double-buffering (correctness unaffected).
        out = run(False)

    return out if bp == B else out[:B]


if __name__ == "__main__":
    # Small shapes consistent with the module's forward.
    B, XDIM1, XDIM2, EMB_DIM = 8, 16, 32, 64
    dtype = jnp.float32

    key = jax.random.PRNGKey(0)
    k1, k2, kw, kb = jax.random.split(key, 4)

    x1 = jax.random.normal(k1, (B, XDIM1), dtype)
    x2 = jax.random.normal(k2, (B, XDIM2), dtype)

    # Deterministic parameter init mimicking torch.nn.Bilinear:
    # uniform(-1/sqrt(xdim1), 1/sqrt(xdim1)) for weight and bias.
    bound = 1.0 / (XDIM1 ** 0.5)
    w = jax.random.uniform(kw, (EMB_DIM, XDIM1, XDIM2), dtype,
                           minval=-bound, maxval=bound)
    b = jax.random.uniform(kb, (EMB_DIM,), dtype, minval=-bound, maxval=bound)

    # NOTE: the PyTorch module constructs nn.Softmax() but never uses it in
    # forward(), so it is intentionally not implemented here.

    # Pack parameters ONCE (outside the per-call path; in a real model this
    # lives with the parameters).
    wf, rep1, rep2, bias_p = prepare_bilinear_params(w, b)

    out = submatrix_ae_forward(x1, x2, wf, rep1, rep2, bias_p)
    out = jax.block_until_ready(out)

    # Pure-JAX reference applying the SAME bf16 roundings as the kernel's MXU
    # path (x1, x2, the x1*x2 outer product, and W in bf16; f32 accumulate).
    f32 = jnp.float32
    x1_q = x1.astype(jnp.bfloat16).astype(f32)
    x2_q = x2.astype(jnp.bfloat16).astype(f32)
    z_ref = (x1_q[:, :, None] * x2_q[:, None, :]).reshape(B, XDIM1 * XDIM2)
    z_ref = z_ref.astype(jnp.bfloat16).astype(f32)
    wf_ref = jnp.transpose(w, (1, 2, 0)).reshape(XDIM1 * XDIM2, EMB_DIM)
    wf_ref = wf_ref.astype(jnp.bfloat16).astype(f32)
    ref = jnp.tanh(
        jnp.dot(z_ref, wf_ref, precision=jax.lax.Precision.HIGHEST)
        + b[None, :])

    assert out.shape == (B, EMB_DIM)
    assert jnp.allclose(out, ref, atol=5e-4, rtol=5e-4), (
        float(jnp.max(jnp.abs(out - ref))))

    print("KERNEL_OK")
</pallas_src>

<mosaic_0001>
module attributes {stable_mosaic.version = 11 : i64} {
  func.func @bilinear_tanh_kernel(%arg0: i32, %arg1: memref<8x16xf32, #tpu.memory_space<vmem>>, %arg2: memref<8x32xf32, #tpu.memory_space<vmem>>, %arg3: memref<16x512xbf16, #tpu.memory_space<vmem>>, %arg4: memref<32x512xbf16, #tpu.memory_space<vmem>>, %arg5: memref<512x64xbf16, #tpu.memory_space<vmem>>, %arg6: memref<1x64xf32, #tpu.memory_space<vmem>>, %arg7: memref<8x64xf32, #tpu.memory_space<vmem>>) attributes {dimension_semantics = [#tpu.dimension_semantics<parallel>], iteration_bounds = array<i64: 1>, scalar_prefetch = 0 : i64, scratch_operands = 0 : i64, tpu.core_type = #tpu.core_type<tc>, window_params = [{transform_indices = @transform_0, window_bounds = array<i64: 8, 16>}, {transform_indices = @transform_1, window_bounds = array<i64: 8, 32>}, {pipeline_mode = #tpu.pipeline_mode<synchronous>, transform_indices = @transform_2, window_bounds = array<i64: 16, 512>}, {pipeline_mode = #tpu.pipeline_mode<synchronous>, transform_indices = @transform_3, window_bounds = array<i64: 32, 512>}, {pipeline_mode = #tpu.pipeline_mode<synchronous>, transform_indices = @transform_4, window_bounds = array<i64: 512, 64>}, {pipeline_mode = #tpu.pipeline_mode<synchronous>, transform_indices = @transform_5, window_bounds = array<i64: 1, 64>}, {transform_indices = @transform_6, window_bounds = array<i64: 8, 64>}]} {
    %c0 = arith.constant 0 : index
    %c0_0 = arith.constant 0 : index
    %0 = vector.load %arg1[%c0, %c0_0] : memref<8x16xf32, #tpu.memory_space<vmem>>, vector<8x16xf32>
    %c0_1 = arith.constant 0 : index
    %c0_2 = arith.constant 0 : index
    %1 = vector.load %arg2[%c0_1, %c0_2] : memref<8x32xf32, #tpu.memory_space<vmem>>, vector<8x32xf32>
    %2 = arith.truncf %0 : vector<8x16xf32> to vector<8x16xbf16>
    %c0_3 = arith.constant 0 : index
    %c0_4 = arith.constant 0 : index
    %3 = vector.load %arg3[%c0_3, %c0_4] : memref<16x512xbf16, #tpu.memory_space<vmem>>, vector<16x512xbf16>
    %cst = arith.constant dense<0.000000e+00> : vector<8x512xf32>
    %4 = tpu.matmul %2, %3, %cst {dimension_numbers = #tpu.dot_dimension_numbers<[1], [0], [0], [1], [0, 0, 1, 1], [], []>} : vector<8x16xbf16>, vector<16x512xbf16>, vector<8x512xf32> -> vector<8x512xf32>
    %5 = arith.truncf %1 : vector<8x32xf32> to vector<8x32xbf16>
    %c0_5 = arith.constant 0 : index
    %c0_6 = arith.constant 0 : index
    %6 = vector.load %arg4[%c0_5, %c0_6] : memref<32x512xbf16, #tpu.memory_space<vmem>>, vector<32x512xbf16>
    %cst_7 = arith.constant dense<0.000000e+00> : vector<8x512xf32>
    %7 = tpu.matmul %5, %6, %cst_7 {dimension_numbers = #tpu.dot_dimension_numbers<[1], [0], [0], [1], [0, 0, 1, 1], [], []>} : vector<8x32xbf16>, vector<32x512xbf16>, vector<8x512xf32> -> vector<8x512xf32>
    %8 = arith.mulf %4, %7 : vector<8x512xf32>
    %9 = arith.truncf %8 : vector<8x512xf32> to vector<8x512xbf16>
    %c0_8 = arith.constant 0 : index
    %c0_9 = arith.constant 0 : index
    %10 = vector.load %arg5[%c0_8, %c0_9] : memref<512x64xbf16, #tpu.memory_space<vmem>>, vector<512x64xbf16>
    %cst_10 = arith.constant dense<0.000000e+00> : vector<8x64xf32>
    %11 = tpu.matmul %9, %10, %cst_10 {dimension_numbers = #tpu.dot_dimension_numbers<[1], [0], [0], [1], [0, 0, 1, 1], [], []>} : vector<8x512xbf16>, vector<512x64xbf16>, vector<8x64xf32> -> vector<8x64xf32>
    %c0_11 = arith.constant 0 : index
    %c0_12 = arith.constant 0 : index
    %12 = vector.load %arg6[%c0_11, %c0_12] : memref<1x64xf32, #tpu.memory_space<vmem>>, vector<1x64xf32>
    %13 = vector.broadcast %12 : vector<1x64xf32> to vector<8x64xf32>
    %14 = arith.addf %11, %13 : vector<8x64xf32>
    %15 = math.tanh %14 : vector<8x64xf32>
    %c0_13 = arith.constant 0 : index
    %c0_14 = arith.constant 0 : index
    %16 = vector.load %arg7[%c0_13, %c0_14] : memref<8x64xf32, #tpu.memory_space<vmem>>, vector<8x64xf32>
    tpu.vector_store %arg7[%c0_13, %c0_14], %15 {strides = array<i32>} : memref<8x64xf32, #tpu.memory_space<vmem>>, vector<8x64xf32>,
    return
  }
  func.func @transform_0(%arg0: i32) -> (i32, i32) {
    %c0_i32 = arith.constant 0 : i32
    %c0_i32_0 = arith.constant 0 : i32
    return %arg0, %c0_i32 : i32, i32
  }
  func.func @transform_1(%arg0: i32) -> (i32, i32) {
    %c0_i32 = arith.constant 0 : i32
    %c0_i32_0 = arith.constant 0 : i32
    return %arg0, %c0_i32 : i32, i32
  }
  func.func @transform_2(%arg0: i32) -> (i32, i32) {
    %c0_i32 = arith.constant 0 : i32
    %c0_i32_0 = arith.constant 0 : i32
    %c0_i32_1 = arith.constant 0 : i32
    return %c0_i32, %c0_i32_0 : i32, i32
  }
  func.func @transform_3(%arg0: i32) -> (i32, i32) {
    %c0_i32 = arith.constant 0 : i32
    %c0_i32_0 = arith.constant 0 : i32
    %c0_i32_1 = arith.constant 0 : i32
    return %c0_i32, %c0_i32_0 : i32, i32
  }
  func.func @transform_4(%arg0: i32) -> (i32, i32) {
    %c0_i32 = arith.constant 0 : i32
    %c0_i32_0 = arith.constant 0 : i32
    %c0_i32_1 = arith.constant 0 : i32
    return %c0_i32, %c0_i32_0 : i32, i32
  }
  func.func @transform_5(%arg0: i32) -> (i32, i32) {
    %c0_i32 = arith.constant 0 : i32
    %c0_i32_0 = arith.constant 0 : i32
    %c0_i32_1 = arith.constant 0 : i32
    return %c0_i32, %c0_i32_0 : i32, i32
  }
  func.func @transform_6(%arg0: i32) -> (i32, i32) {
    %c0_i32 = arith.constant 0 : i32
    %c0_i32_0 = arith.constant 0 : i32
    return %arg0, %c0_i32 : i32, i32
  }
}

module attributes {stable_mosaic.version = 11 : i64} {
  func.func @bilinear_tanh_kernel(%arg0: i32, %arg1: memref<8x16xf32, #tpu.memory_space<vmem>>, %arg2: memref<8x32xf32, #tpu.memory_space<vmem>>, %arg3: memref<16x512xbf16, #tpu.memory_space<vmem>>, %arg4: memref<32x512xbf16, #tpu.memory_space<vmem>>, %arg5: memref<512x64xbf16, #tpu.memory_space<vmem>>, %arg6: memref<1x64xf32, #tpu.memory_space<vmem>>, %arg7: memref<8x64xf32, #tpu.memory_space<vmem>>) attributes {dimension_semantics = [#tpu.dimension_semantics<parallel>], iteration_bounds = array<i64: 1>, scalar_prefetch = 0 : i64, scratch_operands = 0 : i64, tpu.core_type = #tpu.core_type<tc>, window_params = [{transform_indices = @transform_0, window_bounds = array<i64: 8, 16>}, {transform_indices = @transform_1, window_bounds = array<i64: 8, 32>}, {pipeline_mode = #tpu.pipeline_mode<synchronous>, transform_indices = @transform_2, window_bounds = array<i64: 16, 512>}, {pipeline_mode = #tpu.pipeline_mode<synchronous>, transform_indices = @transform_3, window_bounds = array<i64: 32, 512>}, {pipeline_mode = #tpu.pipeline_mode<synchronous>, transform_indices = @transform_4, window_bounds = array<i64: 512, 64>}, {pipeline_mode = #tpu.pipeline_mode<synchronous>, transform_indices = @transform_5, window_bounds = array<i64: 1, 64>}, {transform_indices = @transform_6, window_bounds = array<i64: 8, 64>}]} {
    %c0 = arith.constant 0 : index
    %c0_0 = arith.constant 0 : index
    %0 = vector.load %arg1[%c0, %c0_0] : memref<8x16xf32, #tpu.memory_space<vmem>>, vector<8x16xf32>
    %c0_1 = arith.constant 0 : index
    %c0_2 = arith.constant 0 : index
    %1 = vector.load %arg2[%c0_1, %c0_2] : memref<8x32xf32, #tpu.memory_space<vmem>>, vector<8x32xf32>
    %2 = arith.truncf %0 : vector<8x16xf32> to vector<8x16xbf16>
    %c0_3 = arith.constant 0 : index
    %c0_4 = arith.constant 0 : index
    %3 = vector.load %arg3[%c0_3, %c0_4] : memref<16x512xbf16, #tpu.memory_space<vmem>>, vector<16x512xbf16>
    %cst = arith.constant dense<0.000000e+00> : vector<8x512xf32>
    %4 = tpu.matmul %2, %3, %cst {dimension_numbers = #tpu.dot_dimension_numbers<[1], [0], [0], [1], [0, 0, 1, 1], [], []>} : vector<8x16xbf16>, vector<16x512xbf16>, vector<8x512xf32> -> vector<8x512xf32>
    %5 = arith.truncf %1 : vector<8x32xf32> to vector<8x32xbf16>
    %c0_5 = arith.constant 0 : index
    %c0_6 = arith.constant 0 : index
    %6 = vector.load %arg4[%c0_5, %c0_6] : memref<32x512xbf16, #tpu.memory_space<vmem>>, vector<32x512xbf16>
    %cst_7 = arith.constant dense<0.000000e+00> : vector<8x512xf32>
    %7 = tpu.matmul %5, %6, %cst_7 {dimension_numbers = #tpu.dot_dimension_numbers<[1], [0], [0], [1], [0, 0, 1, 1], [], []>} : vector<8x32xbf16>, vector<32x512xbf16>, vector<8x512xf32> -> vector<8x512xf32>
    %8 = arith.mulf %4, %7 : vector<8x512xf32>
    %9 = arith.truncf %8 : vector<8x512xf32> to vector<8x512xbf16>
    %c0_8 = arith.constant 0 : index
    %c0_9 = arith.constant 0 : index
    %10 = vector.load %arg5[%c0_8, %c0_9] : memref<512x64xbf16, #tpu.memory_space<vmem>>, vector<512x64xbf16>
    %cst_10 = arith.constant dense<0.000000e+00> : vector<8x64xf32>
    %11 = tpu.matmul %9, %10, %cst_10 {dimension_numbers = #tpu.dot_dimension_numbers<[1], [0], [0], [1], [0, 0, 1, 1], [], []>} : vector<8x512xbf16>, vector<512x64xbf16>, vector<8x64xf32> -> vector<8x64xf32>
    %c0_11 = arith.constant 0 : index
    %c0_12 = arith.constant 0 : index
    %12 = vector.load %arg6[%c0_11, %c0_12] : memref<1x64xf32, #tpu.memory_space<vmem>>, vector<1x64xf32>
    %13 = vector.broadcast %12 : vector<1x64xf32> to vector<8x64xf32>
    %14 = arith.addf %11, %13 : vector<8x64xf32>
    %15 = math.tanh %14 : vector<8x64xf32>
    %c0_13 = arith.constant 0 : index
    %c0_14 = arith.constant 0 : index
    %16 = vector.load %arg7[%c0_13, %c0_14] : memref<8x64xf32, #tpu.memory_space<vmem>>, vector<8x64xf32>
    tpu.vector_store %arg7[%c0_13, %c0_14], %15 {strides = array<i32>} : memref<8x64xf32, #tpu.memory_space<vmem>>, vector<8x64xf32>,
    return
  }
  func.func @transform_0(%arg0: i32) -> (i32, i32) {
    %c0_i32 = arith.constant 0 : i32
    %c0_i32_0 = arith.constant 0 : i32
    return %arg0, %c0_i32 : i32, i32
  }
  func.func @transform_1(%arg0: i32) -> (i32, i32) {
    %c0_i32 = arith.constant 0 : i32
    %c0_i32_0 = arith.constant 0 : i32
    return %arg0, %c0_i32 : i32, i32
  }
  func.func @transform_2(%arg0: i32) -> (i32, i32) {
    %c0_i32 = arith.constant 0 : i32
    %c0_i32_0 = arith.constant 0 : i32
    %c0_i32_1 = arith.constant 0 : i32
    return %c0_i32, %c0_i32_0 : i32, i32
  }
  func.func @transform_3(%arg0: i32) -> (i32, i32) {
    %c0_i32 = arith.constant 0 : i32
    %c0_i32_0 = arith.constant 0 : i32
    %c0_i32_1 = arith.constant 0 : i32
    return %c0_i32, %c0_i32_0 : i32, i32
  }
  func.func @transform_4(%arg0: i32) -> (i32, i32) {
    %c0_i32 = arith.constant 0 : i32
    %c0_i32_0 = arith.constant 0 : i32
    %c0_i32_1 = arith.constant 0 : i32
    return %c0_i32, %c0_i32_0 : i32, i32
  }
  func.func @transform_5(%arg0: i32) -> (i32, i32) {
    %c0_i32 = arith.constant 0 : i32
    %c0_i32_0 = arith.constant 0 : i32
    %c0_i32_1 = arith.constant 0 : i32
    return %c0_i32, %c0_i32_0 : i32, i32
  }
  func.func @transform_6(%arg0: i32) -> (i32, i32) {
    %c0_i32 = arith.constant 0 : i32
    %c0_i32_0 = arith.constant 0 : i32
    return %arg0, %c0_i32 : i32, i32
  }
}

</mosaic_0001>

<bundles_post_ra>
// kernel: tpu_custom_call.1
= control target key start
LH: loop header
LB: loop body
LE: loop exit
PB: predicated region body
PF: predicated region fallthrough
CT: control target
= control target key end

     0   :  { %v810_v2 = vmov 0   ;;  %vm52_vm0 = vcmask 130048   ;;  %vm187_vm1 = vcmask 261120   ;;  %s991_s0 = inlined_call_operand.vmem [shape: f32[8,16], index: 0, kind: input, shape index: {}]   ;;  %s992_s1 = inlined_call_operand.vmem [shape: f32[8,32], index: 1, kind: input, shape index: {}]   ;;  %s993_s2 = inlined_call_operand.vmem [shape: bf16[16,512], index: 2, kind: input, shape index: {}]   ;;  %s994_s3 = inlined_call_operand.vmem [shape: bf16[32,512], index: 3, kind: input, shape index: {}]   ;;  %s995_s4 = inlined_call_operand.vmem [shape: bf16[512,64], index: 4, kind: input, shape index: {}]   ;;  %s996_s5 = inlined_call_operand.vmem [shape: f32[1,64], index: 5, kind: input, shape index: {}]   ;;  %s997_s6 = inlined_call_operand.hbm [shape: f32[8,64], index: 6, kind: output, shape index: {}]  }
   0x1   :  { %v736_v0 = vld [vmem:[%s993_s2 + $0x4] ss:$16 sps:$4 sm:$0xff]   ;;  %v738_v1 = vld [vmem:[%s993_s2 + $0xc] ss:$16 sps:$4 sm:$0xff]   ;;  %88 = vmatprep.mubr.bf16.mxu0 %v810_v2  ;;  %129 = vmatprep.mubr.bf16.mxu1 %v810_v2  ;;  %v740_v3 = vld [vmem:[%s993_s2] ss:$16 sps:$4 sm:$0xff]  }
   0x2   :  { %70 = vmatprep.subr.bf16.mxu0 %v736_v0  ;;  %v741_v4 = vld [vmem:[%s993_s2 + $0x8] ss:$16 sps:$4 sm:$0xff]   ;;  %v25_v5 = vld [vmem:[%s991_s0] sm:$0xff]  ;;  %111 = vmatprep.subr.bf16.mxu1 %v738_v1  ;;  %v747_v10 = vld [vmem:[%s994_s3 + $0x2c] ss:$16 sps:$4 sm:$0xff]  }
   0x3   :  { %v27_v6 = vpack.c.bf16 %v25_v5, %v25_v5  ;;  %v742_v7 = vld [vmem:[%s994_s3 + $0x20] ss:$16 sps:$4 sm:$0xff]   ;;  %71 = vmatpush1.bf16.msra.mxu0 %v740_v3  ;;  %112 = vmatpush1.bf16.msra.mxu1 %v741_v4  ;;  %v744_v8 = vld [vmem:[%s994_s3 + $0x24] ss:$16 sps:$4 sm:$0xff]   ;;  %v745_v9 = vld [vmem:[%s994_s3 + $0x28] ss:$16 sps:$4 sm:$0xff]  }
   0x4   :  { %203 = vmatprep.subr.bf16.mxu0 %v744_v8  ;;  %v748_v11 = vld [vmem:[%s994_s3] ss:$16 sps:$4 sm:$0xff]   ;;  %v750_v12 = vld [vmem:[%s994_s3 + $0x4] ss:$16 sps:$4 sm:$0xff]   ;;  %v751_v13 = vld [vmem:[%s994_s3 + $0x8] ss:$16 sps:$4 sm:$0xff]   ;;  %244 = vmatprep.subr.bf16.mxu1 %v747_v10 }
   0x5   :  { %v753_v14 = vld [vmem:[%s994_s3 + $0xc] ss:$16 sps:$4 sm:$0xff]   ;;  %v26_v15 = vld [vmem:[%s992_s1] sm:$0xff]  ;;  %v758_v21 = vld [vmem:[%s995_s4 + $0x70] sm:$0xff]  }
   0x6   :  { %645 = vmatmul.mubr.msk.bf16.vlgmr.msra.gmra.mxu0 %vm52_vm0, %v27_v6  ;;  %646 = vmatmul.mubr.msk.bf16.vlgmr.msra.gmra.mxu1 %vm52_vm0, %v27_v6  ;;  %v754_v16 = vld [vmem:[%s995_s4 + $0x78] sm:$0xff]   ;;  %v138_v18 = vpack.c.bf16 %v26_v15, %v26_v15  ;;  %v759_v22 = vld [vmem:[%s995_s4 + $0xf0] sm:$0xff]   ;;  %v762_v25 = vld [vmem:[%s995_s4 + $0x68] sm:$0xff]  }
   0x7   :  { %204 = vmatpush1.bf16.msra.mxu0 %v742_v7  ;;  %245 = vmatpush1.bf16.msra.mxu1 %v745_v9  ;;  %v755_v17 = vld [vmem:[%s995_s4 + $0xf8] sm:$0xff]   ;;  %v760_v23 = vld [vmem:[%s995_s4 + $0x30] sm:$0xff]   ;;  %v763_v26 = vld [vmem:[%s995_s4 + $0xe8] sm:$0xff]  }
   0x8   :  { %205 = vmatprep.subr.bf16.mxu0 %v750_v12  ;;  %246 = vmatprep.subr.bf16.mxu1 %v753_v14  ;;  %v756_v19 = vld [vmem:[%s995_s4 + $0x38] sm:$0xff]   ;;  %v761_v24 = vld [vmem:[%s995_s4 + $0xb0] sm:$0xff]   ;;  %v764_v27 = vld [vmem:[%s995_s4 + $0x28] sm:$0xff]  }
   0x9   :  { %223 = vmatprep.mubr.bf16.mxu0 %v810_v2  ;;  %264 = vmatprep.mubr.bf16.mxu1 %v810_v2  ;;  %v757_v20 = vld [vmem:[%s995_s4 + $0xb8] sm:$0xff]   ;;  %v765_v28 = vld [vmem:[%s995_s4 + $0xa8] sm:$0xff]   ;;  %v766_v29 = vld [vmem:[%s995_s4 + $0x60] sm:$0xff]  }
   0xa   :  { %v767_v30 = vld [vmem:[%s995_s4 + $0xe0] sm:$0xff]  }
   0xb   :  { %206 = vmatpush1.bf16.msra.mxu0 %v748_v11  ;;  %247 = vmatpush1.bf16.msra.mxu1 %v751_v13  ;;  %v768_v31 = vld [vmem:[%s995_s4 + $0x20] sm:$0xff]  }
   0xc   :  { %690 = vmatprep.subr.bf16.mxu0 %v754_v16  ;;  %712 = vmatprep.subr.bf16.mxu1 %v755_v17  ;;  %v769_v32 = vld [vmem:[%s995_s4 + $0xa0] sm:$0xff]  }
   0xe   :  { %655 = vmatmul.mubr.msk.bf16.vlgmr.msra.gmra.mxu0 %vm187_vm1, %v138_v18  ;;  %656 = vmatmul.mubr.msk.bf16.vlgmr.msra.gmra.mxu1 %vm187_vm1, %v138_v18 }
   0xf   :  { %691 = vmatpush3.bf16.msra.mxu0 %v756_v19  ;;  %713 = vmatpush3.bf16.msra.mxu1 %v757_v20 }
  0x10   :  { %692 = vmatprep.subr.bf16.mxu0 %v758_v21  ;;  %714 = vmatprep.subr.bf16.mxu1 %v759_v22 }
  0x13   :  { %693 = vmatpush3.bf16.msra.mxu0 %v760_v23  ;;  %715 = vmatpush3.bf16.msra.mxu1 %v761_v24 }
  0x14   :  { %694 = vmatprep.subr.bf16.mxu0 %v762_v25  ;;  %716 = vmatprep.subr.bf16.mxu1 %v763_v26 }
  0x17   :  { %695 = vmatpush3.bf16.msra.mxu0 %v764_v27  ;;  %717 = vmatpush3.bf16.msra.mxu1 %v765_v28 }
  0x18   :  { %696 = vmatprep.subr.bf16.mxu0 %v766_v29  ;;  %718 = vmatprep.subr.bf16.mxu1 %v767_v30 }
  0x1b   :  { %697 = vmatpush3.bf16.msra.mxu0 %v768_v31  ;;  %719 = vmatpush3.bf16.msra.mxu1 %v769_v32 }
  0x1c   :  { %11 = vsyncpa [#allocation3], 0  ;;  %v770_v33 = vld [vmem:[%s995_s4 + $0x58] sm:$0xff]   ;;  %v774_v37 = vld [vmem:[%s995_s4 + $0x50] sm:$0xff]   ;;  %s811_s30 = smov [#allocation2]   ;;  %vm625_vm2 = vcmask 523264  }
  0x1d   :  { %v771_v34 = vld [vmem:[%s995_s4 + $0xd8] sm:$0xff]   ;;  %698 = vmatprep.subr.bf16.mxu0 %v770_v33  ;;  %v775_v38 = vld [vmem:[%s995_s4 + $0xd0] sm:$0xff]   ;;  %v778_v41 = vld [vmem:[%s995_s4 + $0x48] sm:$0xff]   ;;  %s633_s7 = sshll.u32 %s811_s30, 4  ;;  %s634_s7 = int_to_ptr.vmem [resolvable:$true] %s633_s7 }
  0x1e   :  { %v772_v35 = vld [vmem:[%s995_s4 + $0x18] sm:$0xff]   ;;  %720 = vmatprep.subr.bf16.mxu1 %v771_v34  ;;  %v776_v39 = vld [vmem:[%s995_s4 + $0x10] sm:$0xff]   ;;  %v779_v42 = vld [vmem:[%s995_s4 + $0xc8] sm:$0xff]   ;;  %s788_s8 = scalar_lea.vmem %s634_s7, 128  ;;  %p793_p1 = scmp.lt.s32.totalorder %s634_s7, %s634_s7 }
  0x1f   :  { %v773_v36 = vld [vmem:[%s995_s4 + $0x98] sm:$0xff]   ;;  %699 = vmatpush3.bf16.msra.mxu0 %v772_v35  ;;  %v777_v40 = vld [vmem:[%s995_s4 + $0x90] sm:$0xff]   ;;  %v780_v43 = vld [vmem:[%s995_s4 + $0x8] sm:$0xff]   ;;  %p789_p0 = scmp.ne.s32.totalorder %s634_s7, %s788_s8  ;;  %p794_p2 = scmp.lt.s32.totalorder %s788_s8, %s788_s8 }
  0x20   :  { %721 = vmatpush3.bf16.msra.mxu1 %v773_v36  ;;  %700 = vmatprep.subr.bf16.mxu0 %v774_v37  ;;  %v781_v44 = vld [vmem:[%s995_s4 + $0x88] sm:$0xff]   ;;  %v782_v45 = vld [vmem:[%s995_s4 + $0x40] sm:$0xff]  }
  0x21   :  { %722 = vmatprep.subr.bf16.mxu1 %v775_v38  ;;  %v783_v46 = vld [vmem:[%s995_s4 + $0xc0] sm:$0xff]   ;;  %p795_p3 = por %p794_p2, %p793_p1 }
  0x22   :  { %v784_v47 = vld [vmem:[%s995_s4] sm:$0xff]  }
  0x23   :  { %701 = vmatpush3.bf16.msra.mxu0 %v776_v39  ;;  %v785_v48 = vld [vmem:[%s995_s4 + $0x80] sm:$0xff]   ;;  %p796_p4 = pnand %p795_p3, %p789_p0 }
  0x24   :  { %723 = vmatpush3.bf16.msra.mxu1 %v777_v40  ;;  %702 = vmatprep.subr.bf16.mxu0 %v778_v41  ;;  %v657_v11 = vld [vmem:[%s996_s5] ss:$0 sm:$0xff] }
  0x25   :  { %724 = vmatprep.subr.bf16.mxu1 %v779_v42 }
  0x27   :  { %703 = vmatpush3.bf16.msra.mxu0 %v780_v43 }
  0x28   :  { %725 = vmatpush3.bf16.msra.mxu1 %v781_v44  ;;  %704 = vmatprep.subr.bf16.mxu0 %v782_v45 }
  0x29   :  { %726 = vmatprep.subr.bf16.mxu1 %v783_v46 }
  0x2b   :  { %705 = vmatpush3.bf16.msra.mxu0 %v784_v47 }
  0x2c   :  { %727 = vmatpush3.bf16.msra.mxu1 %v785_v48 }
  0xc6   :  { %v90_v49 = vpop.f32.mrf.mxu0  ;;  %v131_v50 = vpop.f32.mrf.mxu1 }
  0xc8   :  { %v92_v51 = vpop.f32.mrf.mxu0  ;;  %v133_v52 = vpop.f32.mrf.mxu1 }
  0xca   :  { %v94_v53 = vpop.f32.mrf.mxu0  ;;  %v135_v54 = vpop.f32.mrf.mxu1 }
  0xcc   :  { %v95_v55 = vpop.f32.mrf.mxu0  ;;  %v136_v56 = vpop.f32.mrf.mxu1 }
  0xce   :  { %v225_v57 = vpop.f32.mrf.mxu0  ;;  %v266_v58 = vpop.f32.mrf.mxu1 }
  0xcf   :  { %v273_v59 = vmul.f32 %v225_v57, %v90_v49  ;;  %v275_v61 = vmul.f32 %v266_v58, %v131_v50 }
  0xd0   :  { %v227_v60 = vpop.f32.mrf.mxu0  ;;  %v268_v63 = vpop.f32.mrf.mxu1 }
  0xd1   :  { %v274_v62 = vmul.f32 %v227_v60, %v92_v51  ;;  %v276_v0 = vmul.f32 %v268_v63, %v133_v52  ;;  %v277_v4 = vpack.c.bf16 %v273_v59, %v273_v59  ;;  %v279_v7 = vpack.c.bf16 %v275_v61, %v275_v61 }
  0xd2   :  { %v229_v1 = vpop.f32.mrf.mxu0  ;;  %v270_v3 = vpop.f32.mrf.mxu1 }
  0xd3   :  { %v278_v2 = vpack.c.bf16 %v274_v62, %v274_v62  ;;  %v280_v5 = vpack.c.bf16 %v276_v0, %v276_v0 }
  0xd4   :  { %v230_v6 = vpop.f32.mrf.mxu0  ;;  %v271_v8 = vpop.f32.mrf.mxu1 }
  0xd5   :  { %576 = vmatprep.mubr.bf16.mxu0 %v278_v2  ;;  %616 = vmatprep.mubr.bf16.mxu1 %v280_v5 }
  0xd6   :  { %577 = vmatmul.mubr.bf16.vlgmr.msra.gmra.mxu0 %v277_v4  ;;  %617 = vmatmul.mubr.bf16.vlgmr.msra.gmra.mxu1 %v279_v7 }
 0x196   :  { %v706_v9 = vpop.f32.mrf.mxu0  ;;  %v728_v10 = vpop.f32.mrf.mxu1 }
 0x198   :  { %v707_v12 = vpop.f32.mrf.mxu0  ;;  %v729_v14 = vpop.f32.mrf.mxu1 }
 0x199   :  { %v708_v13 = vadd.f32 %v707_v12, %v706_v9  ;;  %v730_v17 = vadd.f32 %v729_v14, %v728_v10 }
 0x19a   :  { %v709_v15 = vpop.f32.mrf.mxu0  ;;  %v731_v18 = vpop.f32.mrf.mxu1 }
 0x19b   :  { %v579_v16 = vadd.f32 %v708_v13, %v657_v11 }
 0x19c   :  { %v710_v19 = vpop.f32.mrf.mxu0  ;;  %v732_v21 = vpop.f32.mrf.mxu1 }
 0x19d   :  { %v619_v20 = vadd.f32 %v730_v17, %v579_v16 }
 0x19f   :  { %786 = vtanh.f32 %v619_v20 }
 0x1ac   :  { %v787_v22 = vpop.eup %786 }
 0x1ad   :  { %626 = vst.msk [vmem:[#allocation2] sm:$0xff] %vm625_vm2, %v787_v22 }
 0x1ae   :  { %799 = shalt.err (!%p796_p4)
}
 0x1af   :  { %636 = dma.vmem_to_hbm [thread:$0]  %s634_s7, 128, %s997_s6, [#allocation3]  }
 0x1b0   :  { %808 = dma.done.wait [#allocation3], 128  }
 0x1b1   :  { %809 = vsyncadd [#allocation3], 4294967168 }
 0x1b2   :  { %640 = vsyncpa [#allocation3], 1 }

// kernel: tpu_custom_call.1
= control target key start
LH: loop header
LB: loop body
LE: loop exit
PB: predicated region body
PF: predicated region fallthrough
CT: control target
= control target key end

     0   :  { %v810_v2 = vmov 0   ;;  %vm52_vm0 = vcmask 130048   ;;  %vm187_vm1 = vcmask 261120   ;;  %s991_s0 = inlined_call_operand.vmem [shape: f32[8,16], index: 0, kind: input, shape index: {}]   ;;  %s992_s1 = inlined_call_operand.vmem [shape: f32[8,32], index: 1, kind: input, shape index: {}]   ;;  %s993_s2 = inlined_call_operand.vmem [shape: bf16[16,512], index: 2, kind: input, shape index: {}]   ;;  %s994_s3 = inlined_call_operand.vmem [shape: bf16[32,512], index: 3, kind: input, shape index: {}]   ;;  %s995_s4 = inlined_call_operand.vmem [shape: bf16[512,64], index: 4, kind: input, shape index: {}]   ;;  %s996_s5 = inlined_call_operand.vmem [shape: f32[1,64], index: 5, kind: input, shape index: {}]   ;;  %s997_s6 = inlined_call_operand.hbm [shape: f32[8,64], index: 6, kind: output, shape index: {}]  }
   0x1   :  { %v736_v0 = vld [vmem:[%s993_s2 + $0x4] ss:$16 sps:$4 sm:$0xff]   ;;  %v738_v1 = vld [vmem:[%s993_s2 + $0xc] ss:$16 sps:$4 sm:$0xff]   ;;  %88 = vmatprep.mubr.bf16.mxu0 %v810_v2  ;;  %129 = vmatprep.mubr.bf16.mxu1 %v810_v2  ;;  %v740_v3 = vld [vmem:[%s993_s2] ss:$16 sps:$4 sm:$0xff]  }
   0x2   :  { %70 = vmatprep.subr.bf16.mxu0 %v736_v0  ;;  %v741_v4 = vld [vmem:[%s993_s2 + $0x8] ss:$16 sps:$4 sm:$0xff]   ;;  %v25_v5 = vld [vmem:[%s991_s0] sm:$0xff]  ;;  %111 = vmatprep.subr.bf16.mxu1 %v738_v1  ;;  %v747_v10 = vld [vmem:[%s994_s3 + $0x2c] ss:$16 sps:$4 sm:$0xff]  }
   0x3   :  { %v27_v6 = vpack.c.bf16 %v25_v5, %v25_v5  ;;  %v742_v7 = vld [vmem:[%s994_s3 + $0x20] ss:$16 sps:$4 sm:$0xff]   ;;  %71 = vmatpush1.bf16.msra.mxu0 %v740_v3  ;;  %112 = vmatpush1.bf16.msra.mxu1 %v741_v4  ;;  %v744_v8 = vld [vmem:[%s994_s3 + $0x24] ss:$16 sps:$4 sm:$0xff]   ;;  %v745_v9 = vld [vmem:[%s994_s3 + $0x28] ss:$16 sps:$4 sm:$0xff]  }
   0x4   :  { %203 = vmatprep.subr.bf16.mxu0 %v744_v8  ;;  %v748_v11 = vld [vmem:[%s994_s3] ss:$16 sps:$4 sm:$0xff]   ;;  %v750_v12 = vld [vmem:[%s994_s3 + $0x4] ss:$16 sps:$4 sm:$0xff]   ;;  %v751_v13 = vld [vmem:[%s994_s3 + $0x8] ss:$16 sps:$4 sm:$0xff]   ;;  %244 = vmatprep.subr.bf16.mxu1 %v747_v10 }
   0x5   :  { %v753_v14 = vld [vmem:[%s994_s3 + $0xc] ss:$16 sps:$4 sm:$0xff]   ;;  %v26_v15 = vld [vmem:[%s992_s1] sm:$0xff]  ;;  %v758_v21 = vld [vmem:[%s995_s4 + $0x70] sm:$0xff]  }
   0x6   :  { %645 = vmatmul.mubr.msk.bf16.vlgmr.msra.gmra.mxu0 %vm52_vm0, %v27_v6  ;;  %646 = vmatmul.mubr.msk.bf16.vlgmr.msra.gmra.mxu1 %vm52_vm0, %v27_v6  ;;  %v754_v16 = vld [vmem:[%s995_s4 + $0x78] sm:$0xff]   ;;  %v138_v18 = vpack.c.bf16 %v26_v15, %v26_v15  ;;  %v759_v22 = vld [vmem:[%s995_s4 + $0xf0] sm:$0xff]   ;;  %v762_v25 = vld [vmem:[%s995_s4 + $0x68] sm:$0xff]  }
   0x7   :  { %204 = vmatpush1.bf16.msra.mxu0 %v742_v7  ;;  %245 = vmatpush1.bf16.msra.mxu1 %v745_v9  ;;  %v755_v17 = vld [vmem:[%s995_s4 + $0xf8] sm:$0xff]   ;;  %v760_v23 = vld [vmem:[%s995_s4 + $0x30] sm:$0xff]   ;;  %v763_v26 = vld [vmem:[%s995_s4 + $0xe8] sm:$0xff]  }
   0x8   :  { %205 = vmatprep.subr.bf16.mxu0 %v750_v12  ;;  %246 = vmatprep.subr.bf16.mxu1 %v753_v14  ;;  %v756_v19 = vld [vmem:[%s995_s4 + $0x38] sm:$0xff]   ;;  %v761_v24 = vld [vmem:[%s995_s4 + $0xb0] sm:$0xff]   ;;  %v764_v27 = vld [vmem:[%s995_s4 + $0x28] sm:$0xff]  }
   0x9   :  { %223 = vmatprep.mubr.bf16.mxu0 %v810_v2  ;;  %264 = vmatprep.mubr.bf16.mxu1 %v810_v2  ;;  %v757_v20 = vld [vmem:[%s995_s4 + $0xb8] sm:$0xff]   ;;  %v765_v28 = vld [vmem:[%s995_s4 + $0xa8] sm:$0xff]   ;;  %v766_v29 = vld [vmem:[%s995_s4 + $0x60] sm:$0xff]  }
   0xa   :  { %v767_v30 = vld [vmem:[%s995_s4 + $0xe0] sm:$0xff]  }
   0xb   :  { %206 = vmatpush1.bf16.msra.mxu0 %v748_v11  ;;  %247 = vmatpush1.bf16.msra.mxu1 %v751_v13  ;;  %v768_v31 = vld [vmem:[%s995_s4 + $0x20] sm:$0xff]  }
   0xc   :  { %690 = vmatprep.subr.bf16.mxu0 %v754_v16  ;;  %712 = vmatprep.subr.bf16.mxu1 %v755_v17  ;;  %v769_v32 = vld [vmem:[%s995_s4 + $0xa0] sm:$0xff]  }
   0xe   :  { %655 = vmatmul.mubr.msk.bf16.vlgmr.msra.gmra.mxu0 %vm187_vm1, %v138_v18  ;;  %656 = vmatmul.mubr.msk.bf16.vlgmr.msra.gmra.mxu1 %vm187_vm1, %v138_v18 }
   0xf   :  { %691 = vmatpush3.bf16.msra.mxu0 %v756_v19  ;;  %713 = vmatpush3.bf16.msra.mxu1 %v757_v20 }
  0x10   :  { %692 = vmatprep.subr.bf16.mxu0 %v758_v21  ;;  %714 = vmatprep.subr.bf16.mxu1 %v759_v22 }
  0x13   :  { %693 = vmatpush3.bf16.msra.mxu0 %v760_v23  ;;  %715 = vmatpush3.bf16.msra.mxu1 %v761_v24 }
  0x14   :  { %694 = vmatprep.subr.bf16.mxu0 %v762_v25  ;;  %716 = vmatprep.subr.bf16.mxu1 %v763_v26 }
  0x17   :  { %695 = vmatpush3.bf16.msra.mxu0 %v764_v27  ;;  %717 = vmatpush3.bf16.msra.mxu1 %v765_v28 }
  0x18   :  { %696 = vmatprep.subr.bf16.mxu0 %v766_v29  ;;  %718 = vmatprep.subr.bf16.mxu1 %v767_v30 }
  0x1b   :  { %697 = vmatpush3.bf16.msra.mxu0 %v768_v31  ;;  %719 = vmatpush3.bf16.msra.mxu1 %v769_v32 }
  0x1c   :  { %11 = vsyncpa [#allocation3], 0  ;;  %v770_v33 = vld [vmem:[%s995_s4 + $0x58] sm:$0xff]   ;;  %v774_v37 = vld [vmem:[%s995_s4 + $0x50] sm:$0xff]   ;;  %s811_s30 = smov [#allocation2]   ;;  %vm625_vm2 = vcmask 523264  }
  0x1d   :  { %v771_v34 = vld [vmem:[%s995_s4 + $0xd8] sm:$0xff]   ;;  %698 = vmatprep.subr.bf16.mxu0 %v770_v33  ;;  %v775_v38 = vld [vmem:[%s995_s4 + $0xd0] sm:$0xff]   ;;  %v778_v41 = vld [vmem:[%s995_s4 + $0x48] sm:$0xff]   ;;  %s633_s7 = sshll.u32 %s811_s30, 4  ;;  %s634_s7 = int_to_ptr.vmem [resolvable:$true] %s633_s7 }
  0x1e   :  { %v772_v35 = vld [vmem:[%s995_s4 + $0x18] sm:$0xff]   ;;  %720 = vmatprep.subr.bf16.mxu1 %v771_v34  ;;  %v776_v39 = vld [vmem:[%s995_s4 + $0x10] sm:$0xff]   ;;  %v779_v42 = vld [vmem:[%s995_s4 + $0xc8] sm:$0xff]   ;;  %s788_s8 = scalar_lea.vmem %s634_s7, 128  ;;  %p793_p1 = scmp.lt.s32.totalorder %s634_s7, %s634_s7 }
  0x1f   :  { %v773_v36 = vld [vmem:[%s995_s4 + $0x98] sm:$0xff]   ;;  %699 = vmatpush3.bf16.msra.mxu0 %v772_v35  ;;  %v777_v40 = vld [vmem:[%s995_s4 + $0x90] sm:$0xff]   ;;  %v780_v43 = vld [vmem:[%s995_s4 + $0x8] sm:$0xff]   ;;  %p789_p0 = scmp.ne.s32.totalorder %s634_s7, %s788_s8  ;;  %p794_p2 = scmp.lt.s32.totalorder %s788_s8, %s788_s8 }
  0x20   :  { %721 = vmatpush3.bf16.msra.mxu1 %v773_v36  ;;  %700 = vmatprep.subr.bf16.mxu0 %v774_v37  ;;  %v781_v44 = vld [vmem:[%s995_s4 + $0x88] sm:$0xff]   ;;  %v782_v45 = vld [vmem:[%s995_s4 + $0x40] sm:$0xff]  }
  0x21   :  { %722 = vmatprep.subr.bf16.mxu1 %v775_v38  ;;  %v783_v46 = vld [vmem:[%s995_s4 + $0xc0] sm:$0xff]   ;;  %p795_p3 = por %p794_p2, %p793_p1 }
  0x22   :  { %v784_v47 = vld [vmem:[%s995_s4] sm:$0xff]  }
  0x23   :  { %701 = vmatpush3.bf16.msra.mxu0 %v776_v39  ;;  %v785_v48 = vld [vmem:[%s995_s4 + $0x80] sm:$0xff]   ;;  %p796_p4 = pnand %p795_p3, %p789_p0 }
  0x24   :  { %723 = vmatpush3.bf16.msra.mxu1 %v777_v40  ;;  %702 = vmatprep.subr.bf16.mxu0 %v778_v41  ;;  %v657_v11 = vld [vmem:[%s996_s5] ss:$0 sm:$0xff] }
  0x25   :  { %724 = vmatprep.subr.bf16.mxu1 %v779_v42 }
  0x27   :  { %703 = vmatpush3.bf16.msra.mxu0 %v780_v43 }
  0x28   :  { %725 = vmatpush3.bf16.msra.mxu1 %v781_v44  ;;  %704 = vmatprep.subr.bf16.mxu0 %v782_v45 }
  0x29   :  { %726 = vmatprep.subr.bf16.mxu1 %v783_v46 }
  0x2b   :  { %705 = vmatpush3.bf16.msra.mxu0 %v784_v47 }
  0x2c   :  { %727 = vmatpush3.bf16.msra.mxu1 %v785_v48 }
  0xc6   :  { %v90_v49 = vpop.f32.mrf.mxu0  ;;  %v131_v50 = vpop.f32.mrf.mxu1 }
  0xc8   :  { %v92_v51 = vpop.f32.mrf.mxu0  ;;  %v133_v52 = vpop.f32.mrf.mxu1 }
  0xca   :  { %v94_v53 = vpop.f32.mrf.mxu0  ;;  %v135_v54 = vpop.f32.mrf.mxu1 }
  0xcc   :  { %v95_v55 = vpop.f32.mrf.mxu0  ;;  %v136_v56 = vpop.f32.mrf.mxu1 }
  0xce   :  { %v225_v57 = vpop.f32.mrf.mxu0  ;;  %v266_v58 = vpop.f32.mrf.mxu1 }
  0xcf   :  { %v273_v59 = vmul.f32 %v225_v57, %v90_v49  ;;  %v275_v61 = vmul.f32 %v266_v58, %v131_v50 }
  0xd0   :  { %v227_v60 = vpop.f32.mrf.mxu0  ;;  %v268_v63 = vpop.f32.mrf.mxu1 }
  0xd1   :  { %v274_v62 = vmul.f32 %v227_v60, %v92_v51  ;;  %v276_v0 = vmul.f32 %v268_v63, %v133_v52  ;;  %v277_v4 = vpack.c.bf16 %v273_v59, %v273_v59  ;;  %v279_v7 = vpack.c.bf16 %v275_v61, %v275_v61 }
  0xd2   :  { %v229_v1 = vpop.f32.mrf.mxu0  ;;  %v270_v3 = vpop.f32.mrf.mxu1 }
  0xd3   :  { %v278_v2 = vpack.c.bf16 %v274_v62, %v274_v62  ;;  %v280_v5 = vpack.c.bf16 %v276_v0, %v276_v0 }
  0xd4   :  { %v230_v6 = vpop.f32.mrf.mxu0  ;;  %v271_v8 = vpop.f32.mrf.mxu1 }
  0xd5   :  { %576 = vmatprep.mubr.bf16.mxu0 %v278_v2  ;;  %616 = vmatprep.mubr.bf16.mxu1 %v280_v5 }
  0xd6   :  { %577 = vmatmul.mubr.bf16.vlgmr.msra.gmra.mxu0 %v277_v4  ;;  %617 = vmatmul.mubr.bf16.vlgmr.msra.gmra.mxu1 %v279_v7 }
 0x196   :  { %v706_v9 = vpop.f32.mrf.mxu0  ;;  %v728_v10 = vpop.f32.mrf.mxu1 }
 0x198   :  { %v707_v12 = vpop.f32.mrf.mxu0  ;;  %v729_v14 = vpop.f32.mrf.mxu1 }
 0x199   :  { %v708_v13 = vadd.f32 %v707_v12, %v706_v9  ;;  %v730_v17 = vadd.f32 %v729_v14, %v728_v10 }
 0x19a   :  { %v709_v15 = vpop.f32.mrf.mxu0  ;;  %v731_v18 = vpop.f32.mrf.mxu1 }
 0x19b   :  { %v579_v16 = vadd.f32 %v708_v13, %v657_v11 }
 0x19c   :  { %v710_v19 = vpop.f32.mrf.mxu0  ;;  %v732_v21 = vpop.f32.mrf.mxu1 }
 0x19d   :  { %v619_v20 = vadd.f32 %v730_v17, %v579_v16 }
 0x19f   :  { %786 = vtanh.f32 %v619_v20 }
 0x1ac   :  { %v787_v22 = vpop.eup %786 }
 0x1ad   :  { %626 = vst.msk [vmem:[#allocation2] sm:$0xff] %vm625_vm2, %v787_v22 }
 0x1ae   :  { %799 = shalt.err (!%p796_p4)
}
 0x1af   :  { %636 = dma.vmem_to_hbm [thread:$0]  %s634_s7, 128, %s997_s6, [#allocation3]  }
 0x1b0   :  { %808 = dma.done.wait [#allocation3], 128  }
 0x1b1   :  { %809 = vsyncadd [#allocation3], 4294967168 }
 0x1b2   :  { %640 = vsyncpa [#allocation3], 1 }

</bundles_post_ra>
